<compile_context>
chip_gen: v6e
topology: v6e:2x2x1
jax: 0.10.0
libtpu: 0.0.40
codegen_flags: <defaults>
</compile_context>

<pallas_src>
import functools

import jax
import jax.numpy as jnp
from jax import lax
from jax.experimental import pallas as pl
from jax.experimental.pallas import tpu as pltpu


# ----------------------------------------------------------------------------
# Kernel
# ----------------------------------------------------------------------------
def _phenotype_kernel(x_ref, w1_ref, b1_ref, w2_ref, b2_ref, w3_ref, b3_ref,
                      o_ref, h2_ref, *, gelu_dtype, approximate_gelu):
    """Grid = (batch tiles, N tiles of the last layer)."""

    def _gelu(acc_f32, b_ref):
        # Bias add on the fp32 accumulator (biases are pre-cast to fp32),
        # then GELU in `gelu_dtype` (fp32 for fp32 params; bf16 for bf16 params
        # -- the activations get cast to bf16 for the next matmul anyway).
        h = (acc_f32 + b_ref[...]).astype(gelu_dtype)
        if approximate_gelu:
            # tanh approximation: transcendental lands on the EUP slot.
            return jax.nn.gelu(h, approximate=True)
        # Exact erf formulation (matches torch nn.GELU default).
        c = jnp.asarray(0.7071067811865476, h.dtype)
        return 0.5 * h * (1.0 + lax.erf(h * c))

    @pl.when(pl.program_id(1) == 0)
    def _():
        # Layers 1-2 depend only on the batch tile: compute them once per batch
        # tile (first N step) and keep the post-GELU activations in VMEM.
        h1 = jnp.dot(x_ref[...], w1_ref[...],
                     preferred_element_type=jnp.float32)
        h1 = _gelu(h1, b1_ref)
        h2 = jnp.dot(h1.astype(w2_ref.dtype), w2_ref[...],
                     preferred_element_type=jnp.float32)
        h2_ref[...] = _gelu(h2, b2_ref).astype(h2_ref.dtype)

    # Layer 3 for the current N tile.
    out = jnp.dot(h2_ref[...], w3_ref[...], preferred_element_type=jnp.float32)
    o_ref[...] = (out + b3_ref[...]).astype(o_ref.dtype)


# ----------------------------------------------------------------------------
# Tiling / VMEM heuristics
# ----------------------------------------------------------------------------
def _round_up(a, m):
    return ((a + m - 1) // m) * m


def _cdiv(a, b):
    return -(-a // b)


def _vmem_capacity_bytes():
    try:
        return int(pltpu.get_tpu_info().vmem_capacity_bytes)
    except Exception:
        return 64 << 20  # conservative (v7x per-TensorCore)


def _choose_tiling(B, in_dim, H, out_dim, w_item, o_item, budget):
    """Pick (block_b, tn) so single-buffered weights + pipeline buffers fit."""
    # w1, w2 single-buffered (param dtype); b1, b2 fp32.
    resident = (in_dim * H + H * 2 * H) * w_item + (H + 2 * H) * 4

    def per_row_bytes(tn):
        return (2 * in_dim * w_item          # x block, double buffered
                + 2 * tn * o_item            # out block, double buffered
                + 2 * H * w_item             # h2 VMEM scratch
                + (H + 2 * H + tn) * 4)      # fp32 intermediates headroom

    def w3_bytes(tn, nbuf):
        return nbuf * (2 * H * tn * w_item + tn * 4)

    def fits(tn, bb, nbuf):
        return resident + w3_bytes(tn, nbuf) + bb * per_row_bytes(tn) <= budget

    min_bb = 8 if B <= 256 else 256

    # N tile: full output width if it fits (single-buffered, no N grid axis);
    # otherwise halve (multiples of 128 lanes) until it does.
    tn, w3_bufs = out_dim, 1
    if out_dim > 128 and not fits(tn, min_bb, w3_bufs):
        w3_bufs = 2  # N-varying w3/b3 blocks get default double buffering
        splits = 2
        while True:
            tn = _round_up(_cdiv(out_dim, splits), 128)
            if tn <= 128 or fits(tn, min_bb, w3_bufs):
                break
            splits *= 2

    # Batch tile: as big as remaining budget allows (cap 1024 rows), then
    # shrunk to minimise padding waste; force >=2 blocks when B > 8 so v7x's
    # two TensorCores both get work (near-free on 1-TC v5e/v6e).
    avail = budget - resident - w3_bytes(tn, w3_bufs)
    bb_cap = max(8, avail // per_row_bytes(tn))
    target = max(8, (int(min(1024, bb_cap)) // 8) * 8)

    n_blocks = max(1, _cdiv(B, target))
    if n_blocks == 1 and B > 8:
        n_blocks = 2
    block_b = max(8, _round_up(_cdiv(B, n_blocks), 8))
    return block_b, tn


def _const_spec(shape, single_buffer):
    """BlockSpec for a VMEM-resident (grid-invariant) operand."""
    ndim = len(shape)

    def idx(i, j):
        return (0,) * ndim

    if single_buffer:
        try:
            # Constant-index block: one pipeline buffer is enough.
            return pl.BlockSpec(shape, idx, pipeline_mode=pl.Buffered(1))
        except (TypeError, AttributeError):
            pass
    return pl.BlockSpec(shape, idx)


# ----------------------------------------------------------------------------
# Wrapper
# ----------------------------------------------------------------------------
def phenotype_embedder_forward(phenotypes, params, *, block_b=None,
                               out_dtype=None, approximate_gelu=False):
    """phenotypes: [B, input_dim] -> [B, 1, output_dim]."""
    w1, b1, w2, b2, w3, b3 = (params["w1"], params["b1"], params["w2"],
                              params["b2"], params["w3"], params["b3"])
    B, in_dim = phenotypes.shape
    H = w1.shape[1]
    out_dim = w3.shape[1]
    dtype = w1.dtype
    if out_dtype is None:
        out_dtype = dtype

    # Match torch: cast input to the first layer's dtype.
    x = phenotypes.astype(dtype)

    # Biases: tiny, keep fp32-resident so the kernel adds them straight onto
    # the fp32 MXU accumulator (no per-step convert).
    b1f = b1.reshape(1, -1).astype(jnp.float32)
    b2f = b2.reshape(1, -1).astype(jnp.float32)
    b3f = b3.reshape(1, -1).astype(jnp.float32)

    w_item = jnp.dtype(dtype).itemsize
    o_item = jnp.dtype(out_dtype).itemsize

    # VMEM budget derived from the actual chip (v5e/v6e: ~100 MiB, v7x: ~54 MiB).
    vmem_cap = _vmem_capacity_bytes()
    vmem_limit = min(int(vmem_cap * 0.85), 100 << 20)
    budget = int(vmem_limit * 0.9)

    bb, tn = _choose_tiling(B, in_dim, H, out_dim, w_item, o_item, budget)
    if block_b is not None:
        bb = max(8, _round_up(block_b, 8))

    B_pad = _round_up(B, bb)
    nb = B_pad // bb
    nn = _cdiv(out_dim, tn)
    OUT_pad = nn * tn

    if B_pad != B:
        x = jnp.pad(x, ((0, B_pad - B), (0, 0)))
    if OUT_pad != out_dim:
        w3 = jnp.pad(w3, ((0, 0), (0, OUT_pad - out_dim)))
        b3f = jnp.pad(b3f, ((0, 0), (0, OUT_pad - out_dim)))

    # GELU compute dtype: fp32 for fp32 params (exact parity with torch);
    # bf16 for bf16 params (2x VALU throughput on v6e/v7x, activations are
    # cast to bf16 for the next matmul anyway; still correct on v5e).
    gelu_dtype = jnp.float32 if w_item >= 4 else dtype

    kernel = functools.partial(_phenotype_kernel, gelu_dtype=gelu_dtype,
                               approximate_gelu=approximate_gelu)

    # Advisory cost estimate for XLA scheduling around the custom call.
    flops = 2 * B_pad * (in_dim * H + H * 2 * H + 2 * H * OUT_pad)
    transcendentals = B_pad * 3 * H
    bytes_accessed = (B_pad * in_dim * w_item + B_pad * OUT_pad * o_item
                      + (w1.size + w2.size + w3.size) * w_item
                      + (b1f.size + b2f.size + b3f.size) * 4)
    cost = pl.CostEstimate(flops=flops, transcendentals=transcendentals,
                           bytes_accessed=bytes_accessed)

    def run(single_buffer_consts):
        const = lambda a: _const_spec(a.shape, single_buffer_consts)
        if nn == 1:
            w3_spec, b3_spec = const(w3), const(b3f)
        else:
            # N-varying blocks: keep default double buffering for the pipeline.
            w3_spec = pl.BlockSpec((2 * H, tn), lambda i, j: (0, j))
            b3_spec = pl.BlockSpec((1, tn), lambda i, j: (0, j))

        return pl.pallas_call(
            kernel,
            out_shape=jax.ShapeDtypeStruct((B_pad, OUT_pad), out_dtype),
            grid=(nb, nn),
            in_specs=[
                pl.BlockSpec((bb, in_dim), lambda i, j: (i, 0)),
                const(w1), const(b1f),
                const(w2), const(b2f),
                w3_spec, b3_spec,
            ],
            out_specs=pl.BlockSpec((bb, tn), lambda i, j: (i, j)),
            scratch_shapes=[pltpu.VMEM((bb, 2 * H), dtype)],
            compiler_params=pltpu.CompilerParams(
                dimension_semantics=("parallel", "arbitrary"),
                vmem_limit_bytes=vmem_limit,
            ),
            cost_estimate=cost,
        )(x, w1, b1f, w2, b2f, w3, b3f)

    try:
        out2d = run(True)
    except Exception:
        # Fallback: default (double) buffering for the resident weights in case
        # this JAX build rejects pipeline_mode=pl.Buffered(1).
        out2d = run(False)

    # Slice pad rows / pad columns and add the seq dim (unsqueeze(1)) in the
    # wrapper so the kernel's output block stays lane-dense 2-D.
    return out2d[:B, :out_dim][:, None, :]


# ----------------------------------------------------------------------------
# Params / reference
# ----------------------------------------------------------------------------
def init_params(key, input_dim, hidden_dim, output_dim, dtype=jnp.float32):
    k1, k2, k3 = jax.random.split(key, 3)
    std = 0.02
    # Weights stored [in, out]; PyTorch init: normal(0, 0.02), bias zeros.
    w1 = (jax.random.normal(k1, (input_dim, hidden_dim)) * std).astype(dtype)
    w2 = (jax.random.normal(k2, (hidden_dim, hidden_dim * 2)) * std).astype(dtype)
    w3 = (jax.random.normal(k3, (hidden_dim * 2, output_dim)) * std).astype(dtype)
    return {
        "w1": w1, "b1": jnp.zeros((1, hidden_dim), dtype),
        "w2": w2, "b2": jnp.zeros((1, hidden_dim * 2), dtype),
        "w3": w3, "b3": jnp.zeros((1, output_dim), dtype),
    }


def _reference(phenotypes, params):
    x = phenotypes.astype(params["w1"].dtype)
    h = jax.nn.gelu(x @ params["w1"] + params["b1"], approximate=False)
    h = jax.nn.gelu(h @ params["w2"] + params["b2"], approximate=False)
    out = h @ params["w3"] + params["b3"]
    return out[:, None, :]


if __name__ == "__main__":
    # Small shapes consistent with the module: batch=2, input_dim=4,
    # hidden_dim=32, output_dim=128.
    # TODO(synk): nn.Dropout is treated as identity (eval-mode semantics).
    batch, input_dim, hidden_dim, output_dim = 2, 4, 32, 128

    key = jax.random.PRNGKey(0)
    k_params, k_x = jax.random.split(key)
    params = init_params(k_params, input_dim, hidden_dim, output_dim)
    phenotypes = jax.random.normal(k_x, (batch, input_dim), dtype=jnp.float32)

    out = phenotype_embedder_forward(phenotypes, params)
    out = jax.block_until_ready(out)

    assert out.shape == (batch, 1, output_dim), out.shape

    ref = _reference(phenotypes, params)
    assert jnp.allclose(out, ref, atol=1e-5, rtol=1e-5), "mismatch vs JAX reference"

    print("KERNEL_OK")
</pallas_src>

<mosaic_0001>
module attributes {stable_mosaic.version = 11 : i64} {
  func.func @_phenotype_kernel(%arg0: i32, %arg1: i32, %arg2: memref<8x4xf32, #tpu.memory_space<vmem>>, %arg3: memref<4x32xf32, #tpu.memory_space<vmem>>, %arg4: memref<1x32xf32, #tpu.memory_space<vmem>>, %arg5: memref<32x64xf32, #tpu.memory_space<vmem>>, %arg6: memref<1x64xf32, #tpu.memory_space<vmem>>, %arg7: memref<64x128xf32, #tpu.memory_space<vmem>>, %arg8: memref<1x128xf32, #tpu.memory_space<vmem>>, %arg9: memref<8x128xf32, #tpu.memory_space<vmem>>, %arg10: memref<8x64xf32, #tpu.memory_space<vmem>>) attributes {dimension_semantics = [#tpu.dimension_semantics<parallel>, #tpu.dimension_semantics<arbitrary>], iteration_bounds = array<i64: 1, 1>, scalar_prefetch = 0 : i64, scratch_operands = 1 : i64, tpu.core_type = #tpu.core_type<tc>, window_params = [{transform_indices = @transform_0, window_bounds = array<i64: 8, 4>}, {pipeline_mode = #tpu.pipeline_mode<synchronous>, transform_indices = @transform_1, window_bounds = array<i64: 4, 32>}, {pipeline_mode = #tpu.pipeline_mode<synchronous>, transform_indices = @transform_2, window_bounds = array<i64: 1, 32>}, {pipeline_mode = #tpu.pipeline_mode<synchronous>, transform_indices = @transform_3, window_bounds = array<i64: 32, 64>}, {pipeline_mode = #tpu.pipeline_mode<synchronous>, transform_indices = @transform_4, window_bounds = array<i64: 1, 64>}, {pipeline_mode = #tpu.pipeline_mode<synchronous>, transform_indices = @transform_5, window_bounds = array<i64: 64, 128>}, {pipeline_mode = #tpu.pipeline_mode<synchronous>, transform_indices = @transform_6, window_bounds = array<i64: 1, 128>}, {transform_indices = @transform_7, window_bounds = array<i64: 8, 128>}]} {
    %c0_i32 = arith.constant 0 : i32
    %0 = arith.cmpi eq, %arg1, %c0_i32 : i32
    %1 = arith.extui %0 : i1 to i32
    %c0_i32_0 = arith.constant 0 : i32
    %2 = arith.cmpi ne, %1, %c0_i32_0 : i32
    scf.if %2 {
      %c0_8 = arith.constant 0 : index
      %c0_9 = arith.constant 0 : index
      %10 = vector.load %arg2[%c0_8, %c0_9] : memref<8x4xf32, #tpu.memory_space<vmem>>, vector<8x4xf32>
      %c0_10 = arith.constant 0 : index
      %c0_11 = arith.constant 0 : index
      %11 = vector.load %arg3[%c0_10, %c0_11] : memref<4x32xf32, #tpu.memory_space<vmem>>, vector<4x32xf32>
      %cst_12 = arith.constant dense<0.000000e+00> : vector<8x32xf32>
      %12 = tpu.matmul %10, %11, %cst_12 {dimension_numbers = #tpu.dot_dimension_numbers<[1], [0], [0], [1], [0, 0, 1, 1], [], []>} : vector<8x4xf32>, vector<4x32xf32>, vector<8x32xf32> -> vector<8x32xf32>
      %c0_13 = arith.constant 0 : index
      %c0_14 = arith.constant 0 : index
      %13 = vector.load %arg4[%c0_13, %c0_14] : memref<1x32xf32, #tpu.memory_space<vmem>>, vector<1x32xf32>
      %14 = vector.broadcast %13 : vector<1x32xf32> to vector<8x32xf32>
      %15 = arith.addf %12, %14 : vector<8x32xf32>
      %cst_15 = arith.constant 5.000000e-01 : f32
      %16 = vector.broadcast %cst_15 : f32 to vector<8x32xf32>
      %17 = arith.mulf %16, %15 : vector<8x32xf32>
      %cst_16 = arith.constant 0.707106769 : f32
      %18 = vector.broadcast %cst_16 : f32 to vector<8x32xf32>
      %19 = arith.mulf %15, %18 : vector<8x32xf32>
      %20 = math.erf %19 : vector<8x32xf32>
      %cst_17 = arith.constant 1.000000e+00 : f32
      %21 = vector.broadcast %cst_17 : f32 to vector<8x32xf32>
      %22 = arith.addf %21, %20 : vector<8x32xf32>
      %23 = arith.mulf %17, %22 : vector<8x32xf32>
      %c0_18 = arith.constant 0 : index
      %c0_19 = arith.constant 0 : index
      %24 = vector.load %arg5[%c0_18, %c0_19] : memref<32x64xf32, #tpu.memory_space<vmem>>, vector<32x64xf32>
      %cst_20 = arith.constant dense<0.000000e+00> : vector<8x64xf32>
      %25 = tpu.matmul %23, %24, %cst_20 {dimension_numbers = #tpu.dot_dimension_numbers<[1], [0], [0], [1], [0, 0, 1, 1], [], []>} : vector<8x32xf32>, vector<32x64xf32>, vector<8x64xf32> -> vector<8x64xf32>
      %c0_21 = arith.constant 0 : index
      %c0_22 = arith.constant 0 : index
      %26 = vector.load %arg6[%c0_21, %c0_22] : memref<1x64xf32, #tpu.memory_space<vmem>>, vector<1x64xf32>
      %27 = vector.broadcast %26 : vector<1x64xf32> to vector<8x64xf32>
      %28 = arith.addf %25, %27 : vector<8x64xf32>
      %cst_23 = arith.constant 5.000000e-01 : f32
      %29 = vector.broadcast %cst_23 : f32 to vector<8x64xf32>
      %30 = arith.mulf %29, %28 : vector<8x64xf32>
      %cst_24 = arith.constant 0.707106769 : f32
      %31 = vector.broadcast %cst_24 : f32 to vector<8x64xf32>
      %32 = arith.mulf %28, %31 : vector<8x64xf32>
      %33 = math.erf %32 : vector<8x64xf32>
      %cst_25 = arith.constant 1.000000e+00 : f32
      %34 = vector.broadcast %cst_25 : f32 to vector<8x64xf32>
      %35 = arith.addf %34, %33 : vector<8x64xf32>
      %36 = arith.mulf %30, %35 : vector<8x64xf32>
      %c0_26 = arith.constant 0 : index
      %c0_27 = arith.constant 0 : index
      %37 = vector.load %arg10[%c0_26, %c0_27] : memref<8x64xf32, #tpu.memory_space<vmem>>, vector<8x64xf32>
      tpu.vector_store %arg10[%c0_26, %c0_27], %36 {strides = array<i32>} : memref<8x64xf32, #tpu.memory_space<vmem>>, vector<8x64xf32>,
    } else {
    }
    %c0 = arith.constant 0 : index
    %c0_1 = arith.constant 0 : index
    %3 = vector.load %arg10[%c0, %c0_1] : memref<8x64xf32, #tpu.memory_space<vmem>>, vector<8x64xf32>
    %c0_2 = arith.constant 0 : index
    %c0_3 = arith.constant 0 : index
    %4 = vector.load %arg7[%c0_2, %c0_3] : memref<64x128xf32, #tpu.memory_space<vmem>>, vector<64x128xf32>
    %cst = arith.constant dense<0.000000e+00> : vector<8x128xf32>
    %5 = tpu.matmul %3, %4, %cst {dimension_numbers = #tpu.dot_dimension_numbers<[1], [0], [0], [1], [0, 0, 1, 1], [], []>} : vector<8x64xf32>, vector<64x128xf32>, vector<8x128xf32> -> vector<8x128xf32>
    %c0_4 = arith.constant 0 : index
    %c0_5 = arith.constant 0 : index
    %6 = vector.load %arg8[%c0_4, %c0_5] : memref<1x128xf32, #tpu.memory_space<vmem>>, vector<1x128xf32>
    %7 = vector.broadcast %6 : vector<1x128xf32> to vector<8x128xf32>
    %8 = arith.addf %5, %7 : vector<8x128xf32>
    %c0_6 = arith.constant 0 : index
    %c0_7 = arith.constant 0 : index
    %9 = vector.load %arg9[%c0_6, %c0_7] : memref<8x128xf32, #tpu.memory_space<vmem>>, vector<8x128xf32>
    tpu.vector_store %arg9[%c0_6, %c0_7], %8 {strides = array<i32>} : memref<8x128xf32, #tpu.memory_space<vmem>>, vector<8x128xf32>,
    return
  }
  func.func @transform_0(%arg0: i32, %arg1: i32) -> (i32, i32) {
    %c0_i32 = arith.constant 0 : i32
    %c0_i32_0 = arith.constant 0 : i32
    return %arg0, %c0_i32 : i32, i32
  }
  func.func @transform_1(%arg0: i32, %arg1: i32) -> (i32, i32) {
    %c0_i32 = arith.constant 0 : i32
    %c0_i32_0 = arith.constant 0 : i32
    %c0_i32_1 = arith.constant 0 : i32
    return %c0_i32, %c0_i32_0 : i32, i32
  }
  func.func @transform_2(%arg0: i32, %arg1: i32) -> (i32, i32) {
    %c0_i32 = arith.constant 0 : i32
    %c0_i32_0 = arith.constant 0 : i32
    %c0_i32_1 = arith.constant 0 : i32
    return %c0_i32, %c0_i32_0 : i32, i32
  }
  func.func @transform_3(%arg0: i32, %arg1: i32) -> (i32, i32) {
    %c0_i32 = arith.constant 0 : i32
    %c0_i32_0 = arith.constant 0 : i32
    %c0_i32_1 = arith.constant 0 : i32
    return %c0_i32, %c0_i32_0 : i32, i32
  }
  func.func @transform_4(%arg0: i32, %arg1: i32) -> (i32, i32) {
    %c0_i32 = arith.constant 0 : i32
    %c0_i32_0 = arith.constant 0 : i32
    %c0_i32_1 = arith.constant 0 : i32
    return %c0_i32, %c0_i32_0 : i32, i32
  }
  func.func @transform_5(%arg0: i32, %arg1: i32) -> (i32, i32) {
    %c0_i32 = arith.constant 0 : i32
    %c0_i32_0 = arith.constant 0 : i32
    %c0_i32_1 = arith.constant 0 : i32
    return %c0_i32, %c0_i32_0 : i32, i32
  }
  func.func @transform_6(%arg0: i32, %arg1: i32) -> (i32, i32) {
    %c0_i32 = arith.constant 0 : i32
    %c0_i32_0 = arith.constant 0 : i32
    %c0_i32_1 = arith.constant 0 : i32
    return %c0_i32, %c0_i32_0 : i32, i32
  }
  func.func @transform_7(%arg0: i32, %arg1: i32) -> (i32, i32) {
    %c0_i32 = arith.constant 0 : i32
    return %arg0, %arg1 : i32, i32
  }
}

module attributes {stable_mosaic.version = 11 : i64} {
  func.func @_phenotype_kernel(%arg0: i32, %arg1: i32, %arg2: memref<8x4xf32, #tpu.memory_space<vmem>>, %arg3: memref<4x32xf32, #tpu.memory_space<vmem>>, %arg4: memref<1x32xf32, #tpu.memory_space<vmem>>, %arg5: memref<32x64xf32, #tpu.memory_space<vmem>>, %arg6: memref<1x64xf32, #tpu.memory_space<vmem>>, %arg7: memref<64x128xf32, #tpu.memory_space<vmem>>, %arg8: memref<1x128xf32, #tpu.memory_space<vmem>>, %arg9: memref<8x128xf32, #tpu.memory_space<vmem>>, %arg10: memref<8x64xf32, #tpu.memory_space<vmem>>) attributes {dimension_semantics = [#tpu.dimension_semantics<parallel>, #tpu.dimension_semantics<arbitrary>], iteration_bounds = array<i64: 1, 1>, scalar_prefetch = 0 : i64, scratch_operands = 1 : i64, tpu.core_type = #tpu.core_type<tc>, window_params = [{transform_indices = @transform_0, window_bounds = array<i64: 8, 4>}, {pipeline_mode = #tpu.pipeline_mode<synchronous>, transform_indices = @transform_1, window_bounds = array<i64: 4, 32>}, {pipeline_mode = #tpu.pipeline_mode<synchronous>, transform_indices = @transform_2, window_bounds = array<i64: 1, 32>}, {pipeline_mode = #tpu.pipeline_mode<synchronous>, transform_indices = @transform_3, window_bounds = array<i64: 32, 64>}, {pipeline_mode = #tpu.pipeline_mode<synchronous>, transform_indices = @transform_4, window_bounds = array<i64: 1, 64>}, {pipeline_mode = #tpu.pipeline_mode<synchronous>, transform_indices = @transform_5, window_bounds = array<i64: 64, 128>}, {pipeline_mode = #tpu.pipeline_mode<synchronous>, transform_indices = @transform_6, window_bounds = array<i64: 1, 128>}, {transform_indices = @transform_7, window_bounds = array<i64: 8, 128>}]} {
    %c0_i32 = arith.constant 0 : i32
    %0 = arith.cmpi eq, %arg1, %c0_i32 : i32
    %1 = arith.extui %0 : i1 to i32
    %c0_i32_0 = arith.constant 0 : i32
    %2 = arith.cmpi ne, %1, %c0_i32_0 : i32
    scf.if %2 {
      %c0_8 = arith.constant 0 : index
      %c0_9 = arith.constant 0 : index
      %10 = vector.load %arg2[%c0_8, %c0_9] : memref<8x4xf32, #tpu.memory_space<vmem>>, vector<8x4xf32>
      %c0_10 = arith.constant 0 : index
      %c0_11 = arith.constant 0 : index
      %11 = vector.load %arg3[%c0_10, %c0_11] : memref<4x32xf32, #tpu.memory_space<vmem>>, vector<4x32xf32>
      %cst_12 = arith.constant dense<0.000000e+00> : vector<8x32xf32>
      %12 = tpu.matmul %10, %11, %cst_12 {dimension_numbers = #tpu.dot_dimension_numbers<[1], [0], [0], [1], [0, 0, 1, 1], [], []>} : vector<8x4xf32>, vector<4x32xf32>, vector<8x32xf32> -> vector<8x32xf32>
      %c0_13 = arith.constant 0 : index
      %c0_14 = arith.constant 0 : index
      %13 = vector.load %arg4[%c0_13, %c0_14] : memref<1x32xf32, #tpu.memory_space<vmem>>, vector<1x32xf32>
      %14 = vector.broadcast %13 : vector<1x32xf32> to vector<8x32xf32>
      %15 = arith.addf %12, %14 : vector<8x32xf32>
      %cst_15 = arith.constant 5.000000e-01 : f32
      %16 = vector.broadcast %cst_15 : f32 to vector<8x32xf32>
      %17 = arith.mulf %16, %15 : vector<8x32xf32>
      %cst_16 = arith.constant 0.707106769 : f32
      %18 = vector.broadcast %cst_16 : f32 to vector<8x32xf32>
      %19 = arith.mulf %15, %18 : vector<8x32xf32>
      %20 = math.erf %19 : vector<8x32xf32>
      %cst_17 = arith.constant 1.000000e+00 : f32
      %21 = vector.broadcast %cst_17 : f32 to vector<8x32xf32>
      %22 = arith.addf %21, %20 : vector<8x32xf32>
      %23 = arith.mulf %17, %22 : vector<8x32xf32>
      %c0_18 = arith.constant 0 : index
      %c0_19 = arith.constant 0 : index
      %24 = vector.load %arg5[%c0_18, %c0_19] : memref<32x64xf32, #tpu.memory_space<vmem>>, vector<32x64xf32>
      %cst_20 = arith.constant dense<0.000000e+00> : vector<8x64xf32>
      %25 = tpu.matmul %23, %24, %cst_20 {dimension_numbers = #tpu.dot_dimension_numbers<[1], [0], [0], [1], [0, 0, 1, 1], [], []>} : vector<8x32xf32>, vector<32x64xf32>, vector<8x64xf32> -> vector<8x64xf32>
      %c0_21 = arith.constant 0 : index
      %c0_22 = arith.constant 0 : index
      %26 = vector.load %arg6[%c0_21, %c0_22] : memref<1x64xf32, #tpu.memory_space<vmem>>, vector<1x64xf32>
      %27 = vector.broadcast %26 : vector<1x64xf32> to vector<8x64xf32>
      %28 = arith.addf %25, %27 : vector<8x64xf32>
      %cst_23 = arith.constant 5.000000e-01 : f32
      %29 = vector.broadcast %cst_23 : f32 to vector<8x64xf32>
      %30 = arith.mulf %29, %28 : vector<8x64xf32>
      %cst_24 = arith.constant 0.707106769 : f32
      %31 = vector.broadcast %cst_24 : f32 to vector<8x64xf32>
      %32 = arith.mulf %28, %31 : vector<8x64xf32>
      %33 = math.erf %32 : vector<8x64xf32>
      %cst_25 = arith.constant 1.000000e+00 : f32
      %34 = vector.broadcast %cst_25 : f32 to vector<8x64xf32>
      %35 = arith.addf %34, %33 : vector<8x64xf32>
      %36 = arith.mulf %30, %35 : vector<8x64xf32>
      %c0_26 = arith.constant 0 : index
      %c0_27 = arith.constant 0 : index
      %37 = vector.load %arg10[%c0_26, %c0_27] : memref<8x64xf32, #tpu.memory_space<vmem>>, vector<8x64xf32>
      tpu.vector_store %arg10[%c0_26, %c0_27], %36 {strides = array<i32>} : memref<8x64xf32, #tpu.memory_space<vmem>>, vector<8x64xf32>,
    } else {
    }
    %c0 = arith.constant 0 : index
    %c0_1 = arith.constant 0 : index
    %3 = vector.load %arg10[%c0, %c0_1] : memref<8x64xf32, #tpu.memory_space<vmem>>, vector<8x64xf32>
    %c0_2 = arith.constant 0 : index
    %c0_3 = arith.constant 0 : index
    %4 = vector.load %arg7[%c0_2, %c0_3] : memref<64x128xf32, #tpu.memory_space<vmem>>, vector<64x128xf32>
    %cst = arith.constant dense<0.000000e+00> : vector<8x128xf32>
    %5 = tpu.matmul %3, %4, %cst {dimension_numbers = #tpu.dot_dimension_numbers<[1], [0], [0], [1], [0, 0, 1, 1], [], []>} : vector<8x64xf32>, vector<64x128xf32>, vector<8x128xf32> -> vector<8x128xf32>
    %c0_4 = arith.constant 0 : index
    %c0_5 = arith.constant 0 : index
    %6 = vector.load %arg8[%c0_4, %c0_5] : memref<1x128xf32, #tpu.memory_space<vmem>>, vector<1x128xf32>
    %7 = vector.broadcast %6 : vector<1x128xf32> to vector<8x128xf32>
    %8 = arith.addf %5, %7 : vector<8x128xf32>
    %c0_6 = arith.constant 0 : index
    %c0_7 = arith.constant 0 : index
    %9 = vector.load %arg9[%c0_6, %c0_7] : memref<8x128xf32, #tpu.memory_space<vmem>>, vector<8x128xf32>
    tpu.vector_store %arg9[%c0_6, %c0_7], %8 {strides = array<i32>} : memref<8x128xf32, #tpu.memory_space<vmem>>, vector<8x128xf32>,
    return
  }
  func.func @transform_0(%arg0: i32, %arg1: i32) -> (i32, i32) {
    %c0_i32 = arith.constant 0 : i32
    %c0_i32_0 = arith.constant 0 : i32
    return %arg0, %c0_i32 : i32, i32
  }
  func.func @transform_1(%arg0: i32, %arg1: i32) -> (i32, i32) {
    %c0_i32 = arith.constant 0 : i32
    %c0_i32_0 = arith.constant 0 : i32
    %c0_i32_1 = arith.constant 0 : i32
    return %c0_i32, %c0_i32_0 : i32, i32
  }
  func.func @transform_2(%arg0: i32, %arg1: i32) -> (i32, i32) {
    %c0_i32 = arith.constant 0 : i32
    %c0_i32_0 = arith.constant 0 : i32
    %c0_i32_1 = arith.constant 0 : i32
    return %c0_i32, %c0_i32_0 : i32, i32
  }
  func.func @transform_3(%arg0: i32, %arg1: i32) -> (i32, i32) {
    %c0_i32 = arith.constant 0 : i32
    %c0_i32_0 = arith.constant 0 : i32
    %c0_i32_1 = arith.constant 0 : i32
    return %c0_i32, %c0_i32_0 : i32, i32
  }
  func.func @transform_4(%arg0: i32, %arg1: i32) -> (i32, i32) {
    %c0_i32 = arith.constant 0 : i32
    %c0_i32_0 = arith.constant 0 : i32
    %c0_i32_1 = arith.constant 0 : i32
    return %c0_i32, %c0_i32_0 : i32, i32
  }
  func.func @transform_5(%arg0: i32, %arg1: i32) -> (i32, i32) {
    %c0_i32 = arith.constant 0 : i32
    %c0_i32_0 = arith.constant 0 : i32
    %c0_i32_1 = arith.constant 0 : i32
    return %c0_i32, %c0_i32_0 : i32, i32
  }
  func.func @transform_6(%arg0: i32, %arg1: i32) -> (i32, i32) {
    %c0_i32 = arith.constant 0 : i32
    %c0_i32_0 = arith.constant 0 : i32
    %c0_i32_1 = arith.constant 0 : i32
    return %c0_i32, %c0_i32_0 : i32, i32
  }
  func.func @transform_7(%arg0: i32, %arg1: i32) -> (i32, i32) {
    %c0_i32 = arith.constant 0 : i32
    return %arg0, %arg1 : i32, i32
  }
}

</mosaic_0001>

<bundles_post_ra>
// kernel: tpu_custom_call.1
= control target key start
LH: loop header
LB: loop body
LE: loop exit
PB: predicated region body
PF: predicated region fallthrough
CT: control target
= control target key end

     0   :  { %12 = vsyncpa [#allocation4], 0  ;;  %s556_s0 = inlined_call_operand.vmem [shape: f32[8,4], index: 0, kind: input, shape index: {}]   ;;  %s557_s1 = inlined_call_operand.vmem [shape: f32[4,32], index: 1, kind: input, shape index: {}]   ;;  %s558_s2 = inlined_call_operand.vmem [shape: f32[1,32], index: 2, kind: input, shape index: {}]   ;;  %s559_s3 = inlined_call_operand.hbm [shape: f32[32,64], index: 3, kind: input, shape index: {}]   ;;  %s560_s4 = inlined_call_operand.vmem [shape: f32[1,64], index: 4, kind: input, shape index: {}]   ;;  %s561_s5 = inlined_call_operand.hbm [shape: f32[64,128], index: 5, kind: input, shape index: {}]   ;;  %s562_s6 = inlined_call_operand.vmem [shape: f32[1,128], index: 6, kind: input, shape index: {}]   ;;  %s563_s7 = inlined_call_operand.hbm [shape: f32[8,128], index: 7, kind: output, shape index: {}]  }
   0x1   :  { %13 = vsyncpa [#allocation7], 0 }
   0x2   :  { %14 = vsyncpa [#allocation5], 0  ;;  %s485_s24 = smov [#allocation3]  }
   0x3   :  { %s26_s25 = sshll.u32 %s485_s24, 4  ;;  %s27_s25 = int_to_ptr.vmem [resolvable:$true] %s26_s25 }
   0x4   :  { %s427_s26 = scalar_lea.vmem %s27_s25, 512  ;;  %p432_p1 = scmp.lt.s32.totalorder %s27_s25, %s27_s25 }
   0x5   :  { %p428_p0 = scmp.ne.s32.totalorder %s27_s25, %s427_s26  ;;  %p433_p2 = scmp.lt.s32.totalorder %s427_s26, %s427_s26 }
   0x7   :  { %p434_p3 = por %p433_p2, %p432_p1 }
   0x9   :  { %p435_p4 = pnand %p434_p3, %p428_p0 }
   0xb   :  { %438 = shalt.err (!%p435_p4)
}
   0xc   :  { %s486_s27 = smov 128   ;;  %s487_s28 = smov 8  }
   0xd   :  { %32 = dma.hbm_to_vmem [thread:$0]  %s559_s3, 512, %s27_s25, [#allocation4], %s486_s27, %s486_s27, %s487_s28  }
   0xe   :  { %s488_s8 = smov [#allocation6]  }
   0xf   :  { %s40_s9 = sshll.u32 %s488_s8, 4  ;;  %s41_s9 = int_to_ptr.vmem [resolvable:$true] %s40_s9 }
  0x10   :  { %s447_s10 = scalar_lea.vmem %s41_s9, 1024  ;;  %p452_p6 = scmp.lt.s32.totalorder %s41_s9, %s41_s9 }
  0x11   :  { %p448_p5 = scmp.ne.s32.totalorder %s41_s9, %s447_s10  ;;  %p453_p7 = scmp.lt.s32.totalorder %s447_s10, %s447_s10 }
  0x13   :  { %p454_p8 = por %p453_p7, %p452_p6 }
  0x15   :  { %p455_p9 = pnand %p454_p8, %p448_p5 }
  0x17   :  { %458 = shalt.err (!%p455_p9)
}
  0x18   :  { %46 = dma.hbm_to_vmem [thread:$0]  %s561_s5, 1024, %s41_s9, [#allocation7], %s486_s27, %s486_s27, %s487_s28  }
  0x19   :  { %479 = dma.done.wait [#allocation4], 512  }
  0x1a   :  { %480 = vsyncadd [#allocation4], 4294966784 }
  0x1b   :  { %481 = dma.done.wait [#allocation7], 1024  }
  0x1c   :  { %482 = vsyncadd [#allocation7], 4294966272  ;;  %v489_v0 = vmov 0.0   ;;  %vm490_vm0 = vmmov 0   ;;  %vm72_vm1 = vcmask 1043456   ;;  %vm68_vm2 = vcmask 31744  }
  0x1d   :  { %373 = vmatprep.subr.mxu1 %v489_v0  ;;  %375 = vmatprep.mubr.msk.f32.mxu1 %vm490_vm0, %v489_v0  ;;  %v60_v1 = vld [vmem:[%s557_s1] sm:$0xf]  ;;  %v153_v4 = vld [vmem:[#allocation3 + $0x10] sm:$0xff]  ;;  %v152_v5 = vld [vmem:[#allocation3 + $0x8] sm:$0xff]  ;;  %vm162_vm3 = vcmask 261120   ;;  %vm241_vm4 = vcmask 523264  }
  0x1e   :  { %389 = vmatprep.subr.mxu0 %v489_v0  ;;  %405 = vmatprep.mubr.msk.f32.mxu0 %vm490_vm0, %v489_v0  ;;  %v59_v2 = vld [vmem:[%s556_s0] sm:$0xff]  ;;  %v151_v6 = vld [vmem:[#allocation3] sm:$0xff]  ;;  %v250_v17 = vld [vmem:[#allocation6 + $0x30] sm:$0xff]  ;;  %s491_s18 = smov [#allocation8]  }
  0x1f   :  { %374 = vmatpush3.msk.msra.mxu1 %vm72_vm1, %v60_v1  ;;  %v154_v3 = vld [vmem:[#allocation3 + $0x18] sm:$0xff]  ;;  %v249_v18 = vld [vmem:[#allocation6 + $0x28] sm:$0xff]  ;;  %v248_v19 = vld [vmem:[#allocation6 + $0x20] sm:$0xff]  ;;  %s340_s19 = sshll.u32 %s491_s18, 4  ;;  %s341_s19 = int_to_ptr.vmem [resolvable:$true] %s340_s19 }
  0x20   :  { %376 = vmatmul.mubr.msk.f32.vlgmr.msra.gmra.mxu1 %vm68_vm2, %v59_v2  ;;  %378 = vmatprep.subr.mxu1 %v489_v0  ;;  %v350_v7 = vld [vmem:[%s558_s2] ss:$0 sm:$0xff]  ;;  %v246_v21 = vld [vmem:[#allocation6 + $0x10] sm:$0xff]  ;;  %v245_v22 = vld [vmem:[#allocation6 + $0x8] sm:$0xff]  ;;  %p464_p11 = scmp.lt.s32.totalorder %s341_s19, %s341_s19 }
  0x21   :  { %386 = vmatprep.mubr.msk.f32.mxu1 %vm490_vm0, %v489_v0  ;;  %379 = vmatpush3.msra.mxu1 %v154_v3  ;;  %v251_v16 = vld [vmem:[#allocation6 + $0x38] sm:$0xff]  ;;  %v244_v23 = vld [vmem:[#allocation6] sm:$0xff] }
  0x22   :  { %380 = vmatprep.subr.mxu1 %v489_v0  ;;  %390 = vmatpush3.msra.mxu0 %v251_v16  ;;  %v247_v20 = vld [vmem:[#allocation6 + $0x18] sm:$0xff] }
  0x23   :  { %381 = vmatpush3.msra.mxu1 %v153_v4  ;;  %391 = vmatprep.subr.mxu0 %v489_v0  ;;  %v353_v24 = vld [vmem:[%s560_s4] ss:$0 sm:$0xff]  ;;  %s459_s4 = scalar_lea.vmem %s341_s19, 128 }
  0x24   :  { %382 = vmatprep.subr.mxu1 %v489_v0  ;;  %392 = vmatpush3.msra.mxu0 %v250_v17  ;;  %v355_v34 = vld [vmem:[%s562_s6] ss:$0 sm:$0xff]  ;;  %p460_p10 = scmp.ne.s32.totalorder %s341_s19, %s459_s4  ;;  %p465_p12 = scmp.lt.s32.totalorder %s459_s4, %s459_s4 }
  0x25   :  { %383 = vmatpush3.msra.mxu1 %v152_v5  ;;  %393 = vmatprep.subr.mxu0 %v489_v0 }
  0x26   :  { %384 = vmatprep.subr.mxu1 %v489_v0  ;;  %394 = vmatpush3.msra.mxu0 %v249_v18  ;;  %p466_p13 = por %p465_p12, %p464_p11 }
  0x27   :  { %385 = vmatpush3.msra.mxu1 %v151_v6  ;;  %395 = vmatprep.subr.mxu0 %v489_v0 }
  0x28   :  { %396 = vmatpush3.msra.mxu0 %v248_v19  ;;  %p467_p0 = pnand %p466_p13, %p460_p10 }
  0x29   :  { %397 = vmatprep.subr.mxu0 %v489_v0 }
  0x2a   :  { %398 = vmatpush3.msra.mxu0 %v247_v20 }
  0x2b   :  { %399 = vmatprep.subr.mxu0 %v489_v0 }
  0x2c   :  { %400 = vmatpush3.msra.mxu0 %v246_v21 }
  0x2d   :  { %401 = vmatprep.subr.mxu0 %v489_v0 }
  0x2e   :  { %402 = vmatpush3.msra.mxu0 %v245_v22 }
  0x2f   :  { %403 = vmatprep.subr.mxu0 %v489_v0 }
  0x30   :  { %404 = vmatpush3.msra.mxu0 %v244_v23 }
  0xe0   :  { %v142_v8 = vpop.f32.mrf.mxu1 }
  0xe1   :  { %v143_v9 = vadd.f32 %v350_v7, %v142_v8 }
  0xe2   :  { %v377_v10 = vpop.f32.mrf.mxu1 }
  0xe3   :  { %v147_v11 = vmul.f32 0.70710677, %v143_v9  ;;  %v146_v13 = vmul.f32 0.5, %v143_v9 }
  0xe5   :  { %415 = verf.f32 %v147_v11 }
  0xf2   :  { %v416_v12 = vpop.eup %415 }
  0xf3   :  { %v149_v14 = vadd.f32 1.0, %v416_v12 }
  0xf5   :  { %v150_v15 = vmul.f32 %v149_v14, %v146_v13 }
  0xf7   :  { %387 = vmatmul.mubr.msk.f32.vlgmr.msra.gmra.mxu1 %vm162_vm3, %v150_v15 }
 0x1b7   :  { %v232_v25 = vpop.f32.mrf.mxu1 }
 0x1b8   :  { %v233_v26 = vadd.f32 %v353_v24, %v232_v25 }
 0x1b9   :  { %v388_v27 = vpop.f32.mrf.mxu1 }
 0x1ba   :  { %v237_v28 = vmul.f32 0.70710677, %v233_v26  ;;  %v236_v30 = vmul.f32 0.5, %v233_v26 }
 0x1bc   :  { %417 = verf.f32 %v237_v28 }
 0x1c9   :  { %v418_v29 = vpop.eup %417 }
 0x1ca   :  { %v239_v31 = vadd.f32 1.0, %v418_v29 }
 0x1cc   :  { %v240_v32 = vmul.f32 %v239_v31, %v236_v30 }
 0x1ce   :  { %242 = vst.msk [vmem:[#allocation2] sm:$0xff] %vm241_vm4, %v240_v32 }
 0x1d5   :  { %v243_v33 = vld [vmem:[#allocation2] sm:$0xff] }
 0x1d6   :  { %406 = vmatmul.mubr.msk.f32.vlgmr.msra.gmra.mxu0 %vm241_vm4, %v243_v33 }
 0x296   :  { %v329_v35 = vpop.f32.mrf.mxu0 }
 0x297   :  { %v330_v36 = vadd.f32 %v355_v34, %v329_v35 }
 0x298   :  { %v407_v37 = vpop.f32.mrf.mxu0 }
 0x299   :  { %333 = vst [vmem:[#allocation8] sm:$0xff] %v330_v36 }
 0x29a   :  { %470 = shalt.err (!%p467_p0)
}
 0x29b   :  { %343 = dma.vmem_to_hbm [thread:$0]  %s341_s19, 128, %s563_s7, [#allocation5]  }
 0x29c   :  { %483 = dma.done.wait [#allocation5], 128  }
 0x29d   :  { %484 = vsyncadd [#allocation5], 4294967168 }
 0x29e   :  { %347 = vsyncpa [#allocation4], 1 }
 0x29f   :  { %348 = vsyncpa [#allocation7], 1 }
 0x2a0   :  { %349 = vsyncpa [#allocation5], 1 }

// kernel: tpu_custom_call.1
= control target key start
LH: loop header
LB: loop body
LE: loop exit
PB: predicated region body
PF: predicated region fallthrough
CT: control target
= control target key end

     0   :  { %12 = vsyncpa [#allocation4], 0  ;;  %s556_s0 = inlined_call_operand.vmem [shape: f32[8,4], index: 0, kind: input, shape index: {}]   ;;  %s557_s1 = inlined_call_operand.vmem [shape: f32[4,32], index: 1, kind: input, shape index: {}]   ;;  %s558_s2 = inlined_call_operand.vmem [shape: f32[1,32], index: 2, kind: input, shape index: {}]   ;;  %s559_s3 = inlined_call_operand.hbm [shape: f32[32,64], index: 3, kind: input, shape index: {}]   ;;  %s560_s4 = inlined_call_operand.vmem [shape: f32[1,64], index: 4, kind: input, shape index: {}]   ;;  %s561_s5 = inlined_call_operand.hbm [shape: f32[64,128], index: 5, kind: input, shape index: {}]   ;;  %s562_s6 = inlined_call_operand.vmem [shape: f32[1,128], index: 6, kind: input, shape index: {}]   ;;  %s563_s7 = inlined_call_operand.hbm [shape: f32[8,128], index: 7, kind: output, shape index: {}]  }
   0x1   :  { %13 = vsyncpa [#allocation7], 0 }
   0x2   :  { %14 = vsyncpa [#allocation5], 0  ;;  %s485_s24 = smov [#allocation3]  }
   0x3   :  { %s26_s25 = sshll.u32 %s485_s24, 4  ;;  %s27_s25 = int_to_ptr.vmem [resolvable:$true] %s26_s25 }
   0x4   :  { %s427_s26 = scalar_lea.vmem %s27_s25, 512  ;;  %p432_p1 = scmp.lt.s32.totalorder %s27_s25, %s27_s25 }
   0x5   :  { %p428_p0 = scmp.ne.s32.totalorder %s27_s25, %s427_s26  ;;  %p433_p2 = scmp.lt.s32.totalorder %s427_s26, %s427_s26 }
   0x7   :  { %p434_p3 = por %p433_p2, %p432_p1 }
   0x9   :  { %p435_p4 = pnand %p434_p3, %p428_p0 }
   0xb   :  { %438 = shalt.err (!%p435_p4)
}
   0xc   :  { %s486_s27 = smov 128   ;;  %s487_s28 = smov 8  }
   0xd   :  { %32 = dma.hbm_to_vmem [thread:$0]  %s559_s3, 512, %s27_s25, [#allocation4], %s486_s27, %s486_s27, %s487_s28  }
   0xe   :  { %s488_s8 = smov [#allocation6]  }
   0xf   :  { %s40_s9 = sshll.u32 %s488_s8, 4  ;;  %s41_s9 = int_to_ptr.vmem [resolvable:$true] %s40_s9 }
  0x10   :  { %s447_s10 = scalar_lea.vmem %s41_s9, 1024  ;;  %p452_p6 = scmp.lt.s32.totalorder %s41_s9, %s41_s9 }
  0x11   :  { %p448_p5 = scmp.ne.s32.totalorder %s41_s9, %s447_s10  ;;  %p453_p7 = scmp.lt.s32.totalorder %s447_s10, %s447_s10 }
  0x13   :  { %p454_p8 = por %p453_p7, %p452_p6 }
  0x15   :  { %p455_p9 = pnand %p454_p8, %p448_p5 }
  0x17   :  { %458 = shalt.err (!%p455_p9)
}
  0x18   :  { %46 = dma.hbm_to_vmem [thread:$0]  %s561_s5, 1024, %s41_s9, [#allocation7], %s486_s27, %s486_s27, %s487_s28  }
  0x19   :  { %479 = dma.done.wait [#allocation4], 512  }
  0x1a   :  { %480 = vsyncadd [#allocation4], 4294966784 }
  0x1b   :  { %481 = dma.done.wait [#allocation7], 1024  }
  0x1c   :  { %482 = vsyncadd [#allocation7], 4294966272  ;;  %v489_v0 = vmov 0.0   ;;  %vm490_vm0 = vmmov 0   ;;  %vm72_vm1 = vcmask 1043456   ;;  %vm68_vm2 = vcmask 31744  }
  0x1d   :  { %373 = vmatprep.subr.mxu1 %v489_v0  ;;  %375 = vmatprep.mubr.msk.f32.mxu1 %vm490_vm0, %v489_v0  ;;  %v60_v1 = vld [vmem:[%s557_s1] sm:$0xf]  ;;  %v153_v4 = vld [vmem:[#allocation3 + $0x10] sm:$0xff]  ;;  %v152_v5 = vld [vmem:[#allocation3 + $0x8] sm:$0xff]  ;;  %vm162_vm3 = vcmask 261120   ;;  %vm241_vm4 = vcmask 523264  }
  0x1e   :  { %389 = vmatprep.subr.mxu0 %v489_v0  ;;  %405 = vmatprep.mubr.msk.f32.mxu0 %vm490_vm0, %v489_v0  ;;  %v59_v2 = vld [vmem:[%s556_s0] sm:$0xff]  ;;  %v151_v6 = vld [vmem:[#allocation3] sm:$0xff]  ;;  %v250_v17 = vld [vmem:[#allocation6 + $0x30] sm:$0xff]  ;;  %s491_s18 = smov [#allocation8]  }
  0x1f   :  { %374 = vmatpush3.msk.msra.mxu1 %vm72_vm1, %v60_v1  ;;  %v154_v3 = vld [vmem:[#allocation3 + $0x18] sm:$0xff]  ;;  %v249_v18 = vld [vmem:[#allocation6 + $0x28] sm:$0xff]  ;;  %v248_v19 = vld [vmem:[#allocation6 + $0x20] sm:$0xff]  ;;  %s340_s19 = sshll.u32 %s491_s18, 4  ;;  %s341_s19 = int_to_ptr.vmem [resolvable:$true] %s340_s19 }
  0x20   :  { %376 = vmatmul.mubr.msk.f32.vlgmr.msra.gmra.mxu1 %vm68_vm2, %v59_v2  ;;  %378 = vmatprep.subr.mxu1 %v489_v0  ;;  %v350_v7 = vld [vmem:[%s558_s2] ss:$0 sm:$0xff]  ;;  %v246_v21 = vld [vmem:[#allocation6 + $0x10] sm:$0xff]  ;;  %v245_v22 = vld [vmem:[#allocation6 + $0x8] sm:$0xff]  ;;  %p464_p11 = scmp.lt.s32.totalorder %s341_s19, %s341_s19 }
  0x21   :  { %386 = vmatprep.mubr.msk.f32.mxu1 %vm490_vm0, %v489_v0  ;;  %379 = vmatpush3.msra.mxu1 %v154_v3  ;;  %v251_v16 = vld [vmem:[#allocation6 + $0x38] sm:$0xff]  ;;  %v244_v23 = vld [vmem:[#allocation6] sm:$0xff] }
  0x22   :  { %380 = vmatprep.subr.mxu1 %v489_v0  ;;  %390 = vmatpush3.msra.mxu0 %v251_v16  ;;  %v247_v20 = vld [vmem:[#allocation6 + $0x18] sm:$0xff] }
  0x23   :  { %381 = vmatpush3.msra.mxu1 %v153_v4  ;;  %391 = vmatprep.subr.mxu0 %v489_v0  ;;  %v353_v24 = vld [vmem:[%s560_s4] ss:$0 sm:$0xff]  ;;  %s459_s4 = scalar_lea.vmem %s341_s19, 128 }
  0x24   :  { %382 = vmatprep.subr.mxu1 %v489_v0  ;;  %392 = vmatpush3.msra.mxu0 %v250_v17  ;;  %v355_v34 = vld [vmem:[%s562_s6] ss:$0 sm:$0xff]  ;;  %p460_p10 = scmp.ne.s32.totalorder %s341_s19, %s459_s4  ;;  %p465_p12 = scmp.lt.s32.totalorder %s459_s4, %s459_s4 }
  0x25   :  { %383 = vmatpush3.msra.mxu1 %v152_v5  ;;  %393 = vmatprep.subr.mxu0 %v489_v0 }
  0x26   :  { %384 = vmatprep.subr.mxu1 %v489_v0  ;;  %394 = vmatpush3.msra.mxu0 %v249_v18  ;;  %p466_p13 = por %p465_p12, %p464_p11 }
  0x27   :  { %385 = vmatpush3.msra.mxu1 %v151_v6  ;;  %395 = vmatprep.subr.mxu0 %v489_v0 }
  0x28   :  { %396 = vmatpush3.msra.mxu0 %v248_v19  ;;  %p467_p0 = pnand %p466_p13, %p460_p10 }
  0x29   :  { %397 = vmatprep.subr.mxu0 %v489_v0 }
  0x2a   :  { %398 = vmatpush3.msra.mxu0 %v247_v20 }
  0x2b   :  { %399 = vmatprep.subr.mxu0 %v489_v0 }
  0x2c   :  { %400 = vmatpush3.msra.mxu0 %v246_v21 }
  0x2d   :  { %401 = vmatprep.subr.mxu0 %v489_v0 }
  0x2e   :  { %402 = vmatpush3.msra.mxu0 %v245_v22 }
  0x2f   :  { %403 = vmatprep.subr.mxu0 %v489_v0 }
  0x30   :  { %404 = vmatpush3.msra.mxu0 %v244_v23 }
  0xe0   :  { %v142_v8 = vpop.f32.mrf.mxu1 }
  0xe1   :  { %v143_v9 = vadd.f32 %v350_v7, %v142_v8 }
  0xe2   :  { %v377_v10 = vpop.f32.mrf.mxu1 }
  0xe3   :  { %v147_v11 = vmul.f32 0.70710677, %v143_v9  ;;  %v146_v13 = vmul.f32 0.5, %v143_v9 }
  0xe5   :  { %415 = verf.f32 %v147_v11 }
  0xf2   :  { %v416_v12 = vpop.eup %415 }
  0xf3   :  { %v149_v14 = vadd.f32 1.0, %v416_v12 }
  0xf5   :  { %v150_v15 = vmul.f32 %v149_v14, %v146_v13 }
  0xf7   :  { %387 = vmatmul.mubr.msk.f32.vlgmr.msra.gmra.mxu1 %vm162_vm3, %v150_v15 }
 0x1b7   :  { %v232_v25 = vpop.f32.mrf.mxu1 }
 0x1b8   :  { %v233_v26 = vadd.f32 %v353_v24, %v232_v25 }
 0x1b9   :  { %v388_v27 = vpop.f32.mrf.mxu1 }
 0x1ba   :  { %v237_v28 = vmul.f32 0.70710677, %v233_v26  ;;  %v236_v30 = vmul.f32 0.5, %v233_v26 }
 0x1bc   :  { %417 = verf.f32 %v237_v28 }
 0x1c9   :  { %v418_v29 = vpop.eup %417 }
 0x1ca   :  { %v239_v31 = vadd.f32 1.0, %v418_v29 }
 0x1cc   :  { %v240_v32 = vmul.f32 %v239_v31, %v236_v30 }
 0x1ce   :  { %242 = vst.msk [vmem:[#allocation2] sm:$0xff] %vm241_vm4, %v240_v32 }
 0x1d5   :  { %v243_v33 = vld [vmem:[#allocation2] sm:$0xff] }
 0x1d6   :  { %406 = vmatmul.mubr.msk.f32.vlgmr.msra.gmra.mxu0 %vm241_vm4, %v243_v33 }
 0x296   :  { %v329_v35 = vpop.f32.mrf.mxu0 }
 0x297   :  { %v330_v36 = vadd.f32 %v355_v34, %v329_v35 }
 0x298   :  { %v407_v37 = vpop.f32.mrf.mxu0 }
 0x299   :  { %333 = vst [vmem:[#allocation8] sm:$0xff] %v330_v36 }
 0x29a   :  { %470 = shalt.err (!%p467_p0)
}
 0x29b   :  { %343 = dma.vmem_to_hbm [thread:$0]  %s341_s19, 128, %s563_s7, [#allocation5]  }
 0x29c   :  { %483 = dma.done.wait [#allocation5], 128  }
 0x29d   :  { %484 = vsyncadd [#allocation5], 4294967168 }
 0x29e   :  { %347 = vsyncpa [#allocation4], 1 }
 0x29f   :  { %348 = vsyncpa [#allocation7], 1 }
 0x2a0   :  { %349 = vsyncpa [#allocation5], 1 }

</bundles_post_ra>
